<compile_context>
chip_gen: v5e
topology: v5e:2x2
jax: 0.10.0
libtpu: 0.0.40
codegen_flags: <defaults>
</compile_context>

<pallas_src>
import functools
import math

import jax
import jax.numpy as jnp
from jax.experimental import pallas as pl
from jax.experimental.pallas import tpu as pltpu

_LANES = 128
_SUBLANES = 8
_MAX_BLOCK_ROWS = 2048  # 2048x128 f32 = 1 MiB per input per pipeline buffer


def _focal_kernel(x_ref, t_ref, o_ref, *, alpha, gamma, smooth, ignore_index,
                  n, block_rows):
    i = pl.program_id(0)
    j = pl.program_id(1)

    # Logical (unclamped) block position -> global row offset, used for the
    # validity mask.  (The BlockSpec index_map clamps the DMA so even
    # "beyond-the-end" tail blocks read valid memory; we zero them out here.)
    row0 = (i * pl.num_programs(1) + j) * block_rows

    shape = (block_rows, _LANES)
    row_ids = jax.lax.broadcasted_iota(jnp.int32, shape, 0) + row0
    n_full_rows = n // _LANES
    rem = n % _LANES
    mask = row_ids < n_full_rows
    if rem:
        col_ids = jax.lax.broadcasted_iota(jnp.int32, shape, 1)
        mask = mask | ((row_ids == n_full_rows) & (col_ids < rem))

    # Sanitize before any transcendental: padded / out-of-bounds elements get
    # x=0, t=-1 (neither 0 nor 1) -> exactly zero loss contribution.
    x = jnp.where(mask, x_ref[...].astype(jnp.float32), 0.0)
    t = jnp.where(mask, t_ref[...].astype(jnp.float32), -1.0)

    # Shared transcendentals.
    sp_neg = jax.nn.softplus(-x)                       # = -log(sigmoid(x))
    log_prob = jnp.clip(-sp_neg, math.log(smooth), math.log1p(-smooth))
    prob = jnp.exp(log_prob)                           # clamp(sigmoid(x), s, 1-s)

    pos_mask = (t == 1.0).astype(jnp.float32)
    neg_mask = (t == 0.0).astype(jnp.float32)
    if ignore_index is not None:
        valid = (t != float(ignore_index)).astype(jnp.float32)
        pos_mask = pos_mask * valid
        neg_mask = neg_mask * valid

    # pow with integer exponent -> multiplies (VPU), else fall back to power.
    if float(gamma).is_integer() and 0 <= int(gamma) <= 8:
        gi = int(gamma)

        def powg(v):
            if gi == 0:
                return jnp.ones_like(v)
            r = v
            for _ in range(gi - 1):
                r = r * v
            return r
    else:
        def powg(v):
            return jnp.power(v, gamma)

    # pos_loss = -pos_mask * (1 - p)^gamma * log(p)
    pos_loss = -(pos_mask * powg(1.0 - prob)) * log_prob
    # neg_loss = -alpha * neg_mask * p^gamma * logsigmoid(-x)
    #          = +alpha * neg_mask * p^gamma * (x + softplus(-x))
    neg_loss = alpha * (neg_mask * powg(prob)) * (x + sp_neg)
    loss = pos_loss + neg_loss

    # Per-tile partial sum along sublanes -> (1, 128) lane vector; accumulate
    # into this slice's resident VMEM output block (row 0).
    partial = jnp.sum(loss, axis=0, keepdims=True)

    @pl.when(j == 0)
    def _():
        o_ref[...] = jnp.zeros_like(o_ref)

    o_ref[0:1, :] += partial


def binary_focal_loss(output, target, *, alpha=3.0, gamma=2.0,
                      ignore_index=None, reduction='mean', smooth=1e-6):
    assert reduction in ['none', 'mean', 'sum']
    # NOTE: the reference forward() always applies loss.mean() regardless of
    # `reduction`, so we reproduce exactly that.
    assert output.shape == target.shape
    n = int(output.size)

    x = output.reshape(-1)          # native dtype, no cast (kernel casts tiles)
    t = target.reshape(-1)

    # Pad only to a multiple of one (8,128) vreg so the 2-D lane-dense view is
    # legal; the tail is masked in-kernel against the original n.
    # TODO(synk): for n % 1024 != 0 this small pad still copies the arrays;
    # could be avoided with a manual-DMA tail path if it ever matters.
    tile_elems = _SUBLANES * _LANES
    pad = (-n) % tile_elems
    if pad:
        x = jnp.pad(x, (0, pad))
        t = jnp.pad(t, (0, pad))

    rows = (n + pad) // _LANES
    x2 = x.reshape(rows, _LANES)
    t2 = t.reshape(rows, _LANES)

    block_rows = min(_MAX_BLOCK_ROWS, rows)          # multiple of 8 (rows is)
    num_blocks = -(-rows // block_rows)
    num_slices = 2 if num_blocks >= 2 else 1         # v7x: one per TensorCore
    steps = -(-num_blocks // num_slices)

    def in_map(i, j):
        # Clamp so tail iterations of an uneven split still DMA valid memory;
        # the kernel masks them to zero using the unclamped logical index.
        return (jnp.minimum(i * steps + j, num_blocks - 1), 0)

    kernel = functools.partial(
        _focal_kernel,
        alpha=float(alpha),
        gamma=float(gamma),
        smooth=float(smooth),
        ignore_index=ignore_index,
        n=n,
        block_rows=block_rows,
    )

    partials = pl.pallas_call(
        kernel,
        out_shape=jax.ShapeDtypeStruct((num_slices * _SUBLANES, _LANES),
                                       jnp.float32),
        grid_spec=pltpu.PrefetchScalarGridSpec(
            num_scalar_prefetch=0,
            grid=(num_slices, steps),
            in_specs=[
                pl.BlockSpec((block_rows, _LANES), in_map),
                pl.BlockSpec((block_rows, _LANES), in_map),
            ],
            out_specs=pl.BlockSpec((_SUBLANES, _LANES), lambda i, j: (i, 0)),
        ),
        compiler_params=pltpu.CompilerParams(
            dimension_semantics=("parallel", "arbitrary"),
            vmem_limit_bytes=32 * 1024 * 1024,
        ),
    )(x2, t2)

    # Tiny cross-slice / cross-lane reduce + mean in the wrapper.
    return jnp.sum(partials) * jnp.float32(1.0 / n)


def _reference(output, target, alpha=3.0, gamma=2.0, smooth=1e-6):
    prob = jnp.clip(jax.nn.sigmoid(output), smooth, 1.0 - smooth)
    pos_mask = (target == 1).astype(jnp.float32)
    neg_mask = (target == 0).astype(jnp.float32)
    pos_loss = -pos_mask * jnp.power(1.0 - prob, gamma) * jnp.log(prob)
    neg_loss = (-alpha * neg_mask * jnp.power(prob, gamma)
                * (-jax.nn.softplus(output)))
    return jnp.mean(pos_loss + neg_loss)


if __name__ == "__main__":
    key = jax.random.PRNGKey(0)
    k1, k2 = jax.random.split(key)
    # logits (NCHW) and binary targets
    shape = (2, 4, 16, 16)
    logits = jax.random.normal(k1, shape, dtype=jnp.float32) * 2.0
    target = (jax.random.uniform(k2, shape) > 0.5).astype(jnp.float32)

    loss = binary_focal_loss(logits, target, alpha=3.0, gamma=2.0)
    loss = jax.block_until_ready(loss)

    ref = _reference(logits, target)
    assert jnp.allclose(loss, ref, rtol=1e-5, atol=1e-6), (loss, ref)
    print("KERNEL_OK")
</pallas_src>

<mosaic_0001>
module attributes {stable_mosaic.version = 11 : i64} {
  func.func @_focal_kernel(%arg0: i32, %arg1: i32, %arg2: memref<16x128xf32, #tpu.memory_space<vmem>>, %arg3: memref<16x128xf32, #tpu.memory_space<vmem>>, %arg4: memref<8x128xf32, #tpu.memory_space<vmem>>) attributes {dimension_semantics = [#tpu.dimension_semantics<parallel>, #tpu.dimension_semantics<arbitrary>], iteration_bounds = array<i64: 1, 1>, scalar_prefetch = 0 : i64, scratch_operands = 0 : i64, tpu.core_type = #tpu.core_type<tc>, window_params = [{transform_indices = @transform_0, window_bounds = array<i64: 16, 128>}, {transform_indices = @transform_1, window_bounds = array<i64: 16, 128>}, {transform_indices = @transform_2, window_bounds = array<i64: 8, 128>}]} {
    %c1_i32 = arith.constant 1 : i32
    %0 = arith.muli %arg0, %c1_i32 : i32
    %1 = arith.addi %0, %arg1 : i32
    %c16_i32 = arith.constant 16 : i32
    %2 = arith.muli %1, %c16_i32 : i32
    %3 = tpu.iota {dimensions = array<i32: 0>} : vector<16x128xi32>
    %4 = vector.broadcast %2 : i32 to vector<16x128xi32>
    %5 = arith.addi %3, %4 : vector<16x128xi32>
    %c16_i32_0 = arith.constant 16 : i32
    %6 = vector.broadcast %c16_i32_0 : i32 to vector<16x128xi32>
    %7 = arith.cmpi slt, %5, %6 : vector<16x128xi32>
    %c0 = arith.constant 0 : index
    %c0_1 = arith.constant 0 : index
    %8 = vector.load %arg2[%c0, %c0_1] : memref<16x128xf32, #tpu.memory_space<vmem>>, vector<16x128xf32>
    %cst = arith.constant 0.000000e+00 : f32
    %9 = vector.broadcast %cst : f32 to vector<16x128xf32>
    %10 = arith.select %7, %8, %9 : vector<16x128xi1>, vector<16x128xf32>
    %c0_2 = arith.constant 0 : index
    %c0_3 = arith.constant 0 : index
    %11 = vector.load %arg3[%c0_2, %c0_3] : memref<16x128xf32, #tpu.memory_space<vmem>>, vector<16x128xf32>
    %cst_4 = arith.constant -1.000000e+00 : f32
    %12 = vector.broadcast %cst_4 : f32 to vector<16x128xf32>
    %13 = arith.select %7, %11, %12 : vector<16x128xi1>, vector<16x128xf32>
    %cst_5 = arith.constant 0.000000e+00 : f32
    %14 = vector.broadcast %cst_5 : f32 to vector<16x128xf32>
    %15 = arith.subf %14, %10 : vector<16x128xf32>
    %cst_6 = arith.constant 0.000000e+00 : f32
    %16 = vector.broadcast %cst_6 : f32 to vector<16x128xf32>
    %17 = arith.maximumf %15, %16 : vector<16x128xf32>
    %18 = vector.broadcast %cst_6 : f32 to vector<16x128xf32>
    %19 = arith.subf %15, %18 : vector<16x128xf32>
    %20 = arith.cmpf one, %19, %19 : vector<16x128xf32>
    %21 = vector.broadcast %cst_6 : f32 to vector<16x128xf32>
    %22 = arith.addf %15, %21 : vector<16x128xf32>
    %23 = math.absf %19 : vector<16x128xf32>
    %cst_7 = arith.constant 0.000000e+00 : f32
    %24 = vector.broadcast %cst_7 : f32 to vector<16x128xf32>
    %25 = arith.subf %24, %23 : vector<16x128xf32>
    %26 = math.exp %25 : vector<16x128xf32>
    %27 = math.log1p %26 : vector<16x128xf32>
    %28 = arith.addf %17, %27 : vector<16x128xf32>
    %29 = arith.select %20, %22, %28 : vector<16x128xi1>, vector<16x128xf32>
    %cst_8 = arith.constant 0.000000e+00 : f32
    %30 = vector.broadcast %cst_8 : f32 to vector<16x128xf32>
    %31 = arith.subf %30, %29 : vector<16x128xf32>
    %cst_9 = arith.constant -13.8155107 : f32
    %cst_10 = arith.constant -1.00000045E-6 : f32
    %32 = vector.broadcast %cst_9 : f32 to vector<16x128xf32>
    %33 = arith.maximumf %32, %31 : vector<16x128xf32>
    %34 = vector.broadcast %cst_10 : f32 to vector<16x128xf32>
    %35 = arith.minimumf %34, %33 : vector<16x128xf32>
    %36 = math.exp %35 : vector<16x128xf32>
    %cst_11 = arith.constant 1.000000e+00 : f32
    %37 = vector.broadcast %cst_11 : f32 to vector<16x128xf32>
    %38 = arith.cmpf oeq, %13, %37 : vector<16x128xf32>
    %39 = arith.extui %38 : vector<16x128xi1> to vector<16x128xi32>
    %40 = arith.sitofp %39 : vector<16x128xi32> to vector<16x128xf32>
    %cst_12 = arith.constant 0.000000e+00 : f32
    %41 = vector.broadcast %cst_12 : f32 to vector<16x128xf32>
    %42 = arith.cmpf oeq, %13, %41 : vector<16x128xf32>
    %43 = arith.extui %42 : vector<16x128xi1> to vector<16x128xi32>
    %44 = arith.sitofp %43 : vector<16x128xi32> to vector<16x128xf32>
    %cst_13 = arith.constant 1.000000e+00 : f32
    %45 = vector.broadcast %cst_13 : f32 to vector<16x128xf32>
    %46 = arith.subf %45, %36 : vector<16x128xf32>
    %47 = arith.mulf %46, %46 : vector<16x128xf32>
    %48 = arith.mulf %40, %47 : vector<16x128xf32>
    %cst_14 = arith.constant 0.000000e+00 : f32
    %49 = vector.broadcast %cst_14 : f32 to vector<16x128xf32>
    %50 = arith.subf %49, %48 : vector<16x128xf32>
    %51 = arith.mulf %50, %35 : vector<16x128xf32>
    %52 = arith.mulf %36, %36 : vector<16x128xf32>
    %53 = arith.mulf %44, %52 : vector<16x128xf32>
    %cst_15 = arith.constant 3.000000e+00 : f32
    %54 = vector.broadcast %cst_15 : f32 to vector<16x128xf32>
    %55 = arith.mulf %54, %53 : vector<16x128xf32>
    %56 = arith.addf %10, %29 : vector<16x128xf32>
    %57 = arith.mulf %55, %56 : vector<16x128xf32>
    %58 = arith.addf %51, %57 : vector<16x128xf32>
    %cst_16 = arith.constant dense<0.000000e+00> : vector<128xf32>
    %59 = vector.multi_reduction <add>, %58, %cst_16 [0] : vector<16x128xf32> to vector<128xf32>
    %60 = vector.shape_cast %59 : vector<128xf32> to vector<1x128xf32>
    %c0_i32 = arith.constant 0 : i32
    %61 = arith.cmpi eq, %arg1, %c0_i32 : i32
    %62 = arith.extui %61 : i1 to i32
    %c0_i32_17 = arith.constant 0 : i32
    %63 = arith.cmpi ne, %62, %c0_i32_17 : i32
    scf.if %63 {
      %cst_22 = arith.constant 0.000000e+00 : f32
      %67 = vector.broadcast %cst_22 : f32 to vector<8x128xf32>
      %c0_23 = arith.constant 0 : index
      %c0_24 = arith.constant 0 : index
      %68 = vector.load %arg4[%c0_23, %c0_24] : memref<8x128xf32, #tpu.memory_space<vmem>>, vector<8x128xf32>
      tpu.vector_store %arg4[%c0_23, %c0_24], %67 {strides = array<i32>} : memref<8x128xf32, #tpu.memory_space<vmem>>, vector<8x128xf32>,
    } else {
    }
    %c0_18 = arith.constant 0 : index
    %c0_19 = arith.constant 0 : index
    %64 = vector.load %arg4[%c0_18, %c0_19] : memref<8x128xf32, #tpu.memory_space<vmem>>, vector<1x128xf32>
    %65 = arith.addf %64, %60 : vector<1x128xf32>
    %c0_20 = arith.constant 0 : index
    %c0_21 = arith.constant 0 : index
    %66 = vector.load %arg4[%c0_20, %c0_21] : memref<8x128xf32, #tpu.memory_space<vmem>>, vector<1x128xf32>
    tpu.vector_store %arg4[%c0_20, %c0_21], %65 {strides = array<i32>} : memref<8x128xf32, #tpu.memory_space<vmem>>, vector<1x128xf32>,
    return
  }
  func.func @transform_0(%arg0: i32, %arg1: i32) -> (i32, i32) {
    %c1_i32 = arith.constant 1 : i32
    %0 = arith.muli %arg0, %c1_i32 : i32
    %1 = arith.addi %0, %arg1 : i32
    %c0_i32 = arith.constant 0 : i32
    %2 = arith.minsi %1, %c0_i32 : i32
    %c0_i32_0 = arith.constant 0 : i32
    %c0_i32_1 = arith.constant 0 : i32
    return %2, %c0_i32_0 : i32, i32
  }
  func.func @transform_1(%arg0: i32, %arg1: i32) -> (i32, i32) {
    %c1_i32 = arith.constant 1 : i32
    %0 = arith.muli %arg0, %c1_i32 : i32
    %1 = arith.addi %0, %arg1 : i32
    %c0_i32 = arith.constant 0 : i32
    %2 = arith.minsi %1, %c0_i32 : i32
    %c0_i32_0 = arith.constant 0 : i32
    %c0_i32_1 = arith.constant 0 : i32
    return %2, %c0_i32_0 : i32, i32
  }
  func.func @transform_2(%arg0: i32, %arg1: i32) -> (i32, i32) {
    %c0_i32 = arith.constant 0 : i32
    %c0_i32_0 = arith.constant 0 : i32
    return %arg0, %c0_i32 : i32, i32
  }
}

</mosaic_0001>

<bundles_post_ra>
// kernel: tpu_custom_call.1
= control target key start
LH: loop header
LB: loop body
LE: loop exit
PB: predicated region body
PF: predicated region fallthrough
CT: control target
= control target key end

     0   :  { %7 = vsyncpa [#allocation3], 0  ;;  %s339_s0 = inlined_call_operand.hbm [shape: f32[16,128], index: 0, kind: input, shape index: {}]   ;;  %s340_s1 = inlined_call_operand.hbm [shape: f32[16,128], index: 1, kind: input, shape index: {}]   ;;  %s341_s2 = inlined_call_operand.hbm [shape: f32[8,128], index: 2, kind: output, shape index: {}]  }
   0x1   :  { %8 = vsyncpa [#allocation6], 0 }
   0x2   :  { %9 = vsyncpa [#allocation4], 0  ;;  %s20_s11 = sshll.u32 %s339_s0, 4  ;;  %s301_s12 = smov [#allocation2]   ;;  %s21_s11 = int_to_ptr.hbm [resolvable:$true] %s20_s11 }
   0x3   :  { %s22_s13 = sshll.u32 %s301_s12, 4  ;;  %s39_s16 = sshll.u32 %s340_s1, 4  ;;  %s23_s13 = int_to_ptr.vmem [resolvable:$true] %s22_s13  ;;  %s40_s16 = int_to_ptr.hbm [resolvable:$true] %s39_s16 }
   0x4   :  { %s302_s17 = smov 128   ;;  %s303_s18 = smov 8  }
   0x5   :  { %28 = dma.hbm_to_vmem [thread:$0]  %s21_s11, 256, %s23_s13, [#allocation3], %s302_s17, %s302_s17, %s303_s18  }
   0x6   :  { %s304_s19 = smov [#allocation5]  }
   0x7   :  { %s41_s20 = sshll.u32 %s304_s19, 4  ;;  %s42_s20 = int_to_ptr.vmem [resolvable:$true] %s41_s20 }
   0x8   :  { %47 = dma.hbm_to_vmem [thread:$0]  %s40_s16, 256, %s42_s20, [#allocation6], %s302_s17, %s302_s17, %s303_s18  }
   0x9   :  { %295 = dma.done.wait [#allocation3], 256  }
   0xa   :  { %296 = vsyncadd [#allocation3], 4294967040 }
   0xb   :  { %297 = dma.done.wait [#allocation6], 256  }
   0xc   :  { %298 = vsyncadd [#allocation6], 4294967040  ;;  %v328_v0 = vld [vmem:[#allocation2] sm:$0xff]  ;;  %v330_v1 = vld [vmem:[#allocation2 + $0x8] sm:$0xff]  ;;  %v305_v10 = vmov 0.0   ;;  %s306_s0 = smov [#allocation7]  }
   0xd   :  { %v82_v2 = vsub.f32 0.0, %v328_v0  ;;  %v83_v3 = vsub.f32 0.0, %v330_v1  ;;  %175 = vst [vmem:[#allocation7] sm:$0xff] %v305_v10  ;;  %v78_v43 = vld [vmem:[#allocation5] sm:$0xff]  ;;  %v79_v44 = vld [vmem:[#allocation5 + $0x8] sm:$0xff]  ;;  %s184_s1 = sshll.u32 %s306_s0, 4  ;;  %s185_s1 = int_to_ptr.vmem [resolvable:$true] %s184_s1 }
   0xe   :  { %vm136_vm4 = vcmp.eq.f32.partialorder %v78_v43, 0.0  ;;  %vm137_vm5 = vcmp.eq.f32.partialorder %v79_v44, 0.0  ;;  %vm130_vm6 = vcmp.eq.f32.partialorder %v78_v43, 1.0  ;;  %vm131_vm7 = vcmp.eq.f32.partialorder %v79_v44, 1.0  ;;  %s186_s23 = sshll.u32 %s341_s2, 4  ;;  %s187_s23 = int_to_ptr.hbm [resolvable:$true] %s186_s23 }
   0xf   :  { %v90_v4 = vand.u32 2147483647, %v82_v2  ;;  %v91_v5 = vand.u32 2147483647, %v83_v3  ;;  %v84_v23 = vmax.f32 %v82_v2, 0.0  ;;  %v85_v26 = vmax.f32 %v83_v3, 0.0 }
  0x10   :  { %vm86_vm2 = vcmp.ne.f32.partialorder %v82_v2, %v82_v2  ;;  %vm87_vm3 = vcmp.ne.f32.partialorder %v83_v3, %v83_v3  ;;  %v203_v46 = vsel %vm136_vm4, 1.0, %v305_v10  ;;  %v204_v48 = vsel %vm137_vm5, 1.0, %v305_v10 }
  0x11   :  { %v92_v6 = vsub.f32 0.0, %v90_v4  ;;  %v93_v7 = vsub.f32 0.0, %v91_v5  ;;  %v201_v51 = vsel %vm130_vm6, 1.0, %v305_v10  ;;  %v202_v54 = vsel %vm131_vm7, 1.0, %v305_v10 }
  0x13   :  { %v94_v8 = vmul.f32 1.442695, %v92_v6  ;;  %v96_v9 = vmul.f32 1.442695, %v93_v7 }
  0x15   :  { %211 = vpow2.f32 %v94_v8 }
  0x16   :  { %213 = vpow2.f32 %v96_v9 }
  0x1b   :  { %v212_v11 = vpop.eup %211 }
  0x1c   :  { %v214_v12 = vpop.eup %213  ;;  %v98_v13 = vadd.f32 1.0, %v212_v11  ;;  %v101_v14 = vmul.f32 -0.5, %v212_v11  ;;  %v104_v18 = vand.u32 2147483647, %v212_v11 }
  0x1d   :  { %v107_v15 = vadd.f32 1.0, %v214_v12  ;;  %v110_v16 = vmul.f32 -0.5, %v214_v12  ;;  %v113_v20 = vand.u32 2147483647, %v214_v12 }
  0x1e   :  { %215 = vlog2.f32 %v98_v13  ;;  %v102_v17 = vadd.f32 1.0, %v101_v14  ;;  %vm105_vm0 = vcmp.lt.f32.partialorder %v104_v18, 0.0004427343 }
  0x1f   :  { %217 = vlog2.f32 %v107_v15  ;;  %v111_v19 = vadd.f32 1.0, %v110_v16  ;;  %vm114_vm1 = vcmp.lt.f32.partialorder %v113_v20, 0.0004427343  ;;  %v176_v16 = vld [vmem:[#allocation7] sm:$0x1] }
  0x20   :  { %v103_v21 = vmul.f32 %v212_v11, %v102_v17 }
  0x21   :  { %v112_v24 = vmul.f32 %v214_v12, %v111_v19 }
  0x24   :  { %v216_v22 = vpop.eup %215 }
  0x25   :  { %v218_v25 = vpop.eup %217  ;;  %v100_v27 = vmul.f32 0.6931472, %v216_v22 }
  0x26   :  { %v109_v28 = vmul.f32 0.6931472, %v218_v25 }
  0x27   :  { %v106_v29 = vsel %vm105_vm0, %v103_v21, %v100_v27 }
  0x28   :  { %v115_v30 = vsel %vm114_vm1, %v112_v24, %v109_v28  ;;  %v116_v31 = vadd.f32 %v106_v29, %v84_v23 }
  0x29   :  { %v117_v32 = vadd.f32 %v115_v30, %v85_v26 }
  0x2a   :  { %v118_v33 = vsel %vm86_vm2, %v82_v2, %v116_v31 }
  0x2b   :  { %v119_v34 = vsel %vm87_vm3, %v83_v3, %v117_v32  ;;  %v120_v35 = vsub.f32 0.0, %v118_v33  ;;  %v158_v57 = vadd.f32 %v118_v33, %v328_v0 }
  0x2c   :  { %v121_v36 = vsub.f32 0.0, %v119_v34  ;;  %v159_v60 = vadd.f32 %v119_v34, %v330_v1 }
  0x2d   :  { %v122_v37 = vmax.f32 %v120_v35, -13.815511 }
  0x2e   :  { %v123_v38 = vmax.f32 %v121_v36, -13.815511 }
  0x2f   :  { %v124_v39 = vmin.f32 %v122_v37, -1.0000005e-06 }
  0x30   :  { %v125_v40 = vmin.f32 %v123_v38, -1.0000005e-06 }
  0x31   :  { %v126_v41 = vmul.f32 1.442695, %v124_v39 }
  0x32   :  { %v128_v42 = vmul.f32 1.442695, %v125_v40 }
  0x33   :  { %219 = vpow2.f32 %v126_v41 }
  0x34   :  { %221 = vpow2.f32 %v128_v42 }
  0x39   :  { %v220_v45 = vpop.eup %219 }
  0x3a   :  { %v222_v47 = vpop.eup %221  ;;  %v142_v49 = vsub.f32 1.0, %v220_v45  ;;  %v152_v50 = vmul.f32 %v220_v45, %v220_v45 }
  0x3b   :  { %v143_v52 = vsub.f32 1.0, %v222_v47  ;;  %v153_v53 = vmul.f32 %v222_v47, %v222_v47 }
  0x3c   :  { %v144_v55 = vmul.f32 %v142_v49, %v142_v49  ;;  %v154_v56 = vmul.f32 %v203_v46, %v152_v50 }
  0x3d   :  { %v145_v58 = vmul.f32 %v143_v52, %v143_v52  ;;  %v155_v59 = vmul.f32 %v204_v48, %v153_v53 }
  0x3e   :  { %v146_v61 = vmul.f32 %v201_v51, %v144_v55  ;;  %v156_v62 = vmul.f32 3.0, %v154_v56 }
  0x3f   :  { %v147_v63 = vmul.f32 %v202_v54, %v145_v58  ;;  %v157_v2 = vmul.f32 3.0, %v155_v59 }
  0x40   :  { %v148_v3 = vsub.f32 0.0, %v146_v61  ;;  %v160_v4 = vmul.f32 %v158_v57, %v156_v62 }
  0x41   :  { %v149_v5 = vsub.f32 0.0, %v147_v63  ;;  %v161_v6 = vmul.f32 %v159_v60, %v157_v2 }
  0x42   :  { %v150_v7 = vmul.f32 %v148_v3, %v124_v39 }
  0x43   :  { %v151_v8 = vmul.f32 %v149_v5, %v125_v40 }
  0x44   :  { %v162_v9 = vadd.f32 %v160_v4, %v150_v7 }
  0x45   :  { %v163_v10 = vadd.f32 %v161_v6, %v151_v8 }
  0x47   :  { %v164_v11 = vadd.f32 %v163_v10, %v162_v9 }
  0x49   :  { %v165_v12 = vrot.slane %v164_v11, 4 }
  0x4b   :  { %v166_v13 = vadd.f32 %v165_v12, %v164_v11 }
  0x4d   :  { %v167_v0 = vrot.slane %v166_v13, 2 }
  0x4f   :  { %v168_v14 = vadd.f32 %v167_v0, %v166_v13 }
  0x51   :  { %v169_v15 = vrot.slane %v168_v14, 1 }
  0x53   :  { %v170_v1 = vadd.f32 %v169_v15, %v168_v14 }
  0x55   :  { %v177_v17 = vadd.f32 %v176_v16, %v170_v1 }
  0x57   :  { %178 = vst [vmem:[#allocation7] sm:$0x1] %v177_v17 }
  0x58   :  { %189 = dma.vmem_to_hbm [thread:$0]  %s185_s1, 128, %s187_s23, [#allocation4]  }
  0x59   :  { %299 = dma.done.wait [#allocation4], 128  }
  0x5a   :  { %300 = vsyncadd [#allocation4], 4294967168 }
  0x5b   :  { %194 = vsyncpa [#allocation3], 1 }
  0x5c   :  { %195 = vsyncpa [#allocation6], 1 }
  0x5d   :  { %196 = vsyncpa [#allocation4], 1 }

</bundles_post_ra>
